<compile_context>
chip_gen: v5e
topology: v5e:2x2
jax: 0.10.0
libtpu: 0.0.40
codegen_flags: <defaults>
</compile_context>

<pallas_src>
import math

import jax
import jax.numpy as jnp
from jax.experimental import pallas as pl
from jax.experimental.pallas import tpu as pltpu


def _round_up(v, m):
    return (v + m - 1) // m * m


def _choose_node_tiling(num_nodes, tile_n):
    """Pick (tn, n_pad): node tile (rows) and padded node count.

    n_pad stays at the minimal 128-multiple whenever a divisor tile exists;
    tn is capped so the grid has >=2 (>=4 when possible) steps for megacore
    sharding and pipeline overlap.
    """
    m = _round_up(max(num_nodes, 1), 128) // 128     # node extent in 128-row blocks
    t = max(1, min(tile_n // 128, m))                # target tile in blocks
    if m >= 4:
        t = max(1, min(t, m // 4))                   # >= 4 grid steps
    elif m >= 2:
        t = max(1, min(t, m // 2))                   # >= 2 grid steps
    # Largest divisor of m that is <= t -> zero ghost rows.
    d = next(dd for dd in range(t, 0, -1) if m % dd == 0)
    steps_ideal = -(-m // t)
    if m // d > 2 * steps_ideal:
        # No good divisor (e.g. prime m): accept minimal tile padding instead
        # of many tiny grid steps.
        d = t
        m = steps_ideal * d
    return 128 * d, 128 * m


def _graphsage_kernel(x_ref, w_enc_ref, w_cls_ref, scores_ref, embeds_ref):
    # x_ref:      (TN, F_pad)      f32 or bf16  -- node-feature tile (streamed)
    # w_enc_ref:  (E_pad, F_pad)   bf16         -- encoder weight (resident)
    # w_cls_ref:  (C_pad, E_pad)   bf16         -- self.weight (resident)
    # scores_ref: (C_pad, TN)      f32          -- scores tile, lane-dense along N
    # embeds_ref: (E_pad, TN)      bf16         -- embeds tile, lane-dense along N
    w_enc = w_enc_ref[...]
    w_cls = w_cls_ref[...]
    x = x_ref[...].astype(w_enc.dtype)   # in-kernel cast to bf16 (VPU, free)

    # enc(nodes): relu(W_enc @ X^T) -> (E_pad, TN).  Contract the F axes
    # directly so the streamed operand never needs an in-kernel transpose.
    emb = jax.lax.dot_general(
        w_enc, x,
        dimension_numbers=(((1,), (1,)), ((), ())),
        preferred_element_type=jnp.float32,
    )
    emb = jnp.maximum(emb, 0.0)
    embeds_ref[...] = emb.astype(embeds_ref.dtype)   # bf16 writeback

    # scores = self.weight.mm(embeds) -> (C_pad, TN), stored lane-dense.
    scores = jnp.dot(
        w_cls, emb.astype(w_cls.dtype), preferred_element_type=jnp.float32
    )
    scores_ref[...] = scores.astype(scores_ref.dtype)


def supervised_graphsage_forward(x, w_enc, w_cls, *, tile_n=1024,
                                 compute_dtype=jnp.bfloat16,
                                 embeds_dtype=jnp.bfloat16,
                                 scores_dtype=jnp.float32):
    """Fused GraphSAGE-head forward.

    x:     (num_nodes, feat_dim)     node features (f32)
    w_enc: (embed_dim, feat_dim)     encoder weight
    w_cls: (num_classes, embed_dim)  classifier weight (self.weight)

    Returns (scores.T, embeds) like the PyTorch module:
      scores.T : (num_nodes, num_classes)  f32
      embeds   : (embed_dim, num_nodes)    bf16 (compute precision of this model)
    """
    num_nodes, feat_dim = x.shape
    embed_dim = w_enc.shape[0]
    num_classes = w_cls.shape[0]

    # Layout padding (wrapper-side plumbing, sliced off afterwards).
    f_pad = _round_up(feat_dim, 128)      # lane dim of x / w_enc
    e_pad = _round_up(embed_dim, 16)      # sublane granularity only (no 128 inflation)
    c_pad = _round_up(num_classes, 8)

    tn, n_pad = _choose_node_tiling(num_nodes, tile_n)
    grid = (n_pad // tn,)

    if (n_pad, f_pad) == (num_nodes, feat_dim):
        # Stream the features as-is; the kernel casts to bf16 on the VPU.
        x_in = x
    else:
        # One combined pad+cast pass (read f32, write bf16).
        x_in = jnp.pad(
            x, ((0, n_pad - num_nodes), (0, f_pad - feat_dim))
        ).astype(compute_dtype)

    w_enc_p = jnp.pad(
        w_enc, ((0, e_pad - embed_dim), (0, f_pad - feat_dim))
    ).astype(compute_dtype)
    w_cls_p = jnp.pad(
        w_cls, ((0, c_pad - num_classes), (0, e_pad - embed_dim))
    ).astype(compute_dtype)

    cost = pl.CostEstimate(
        flops=2 * n_pad * f_pad * e_pad + 2 * n_pad * e_pad * c_pad,
        transcendentals=0,
        bytes_accessed=(
            x_in.size * jnp.dtype(x_in.dtype).itemsize
            + (w_enc_p.size + w_cls_p.size) * jnp.dtype(compute_dtype).itemsize
            + c_pad * n_pad * jnp.dtype(scores_dtype).itemsize
            + e_pad * n_pad * jnp.dtype(embeds_dtype).itemsize
        ),
    )

    scores_cn, embeds_full = pl.pallas_call(
        _graphsage_kernel,
        grid=grid,
        in_specs=[
            # streamed node-feature tiles
            pl.BlockSpec((tn, f_pad), lambda i: (i, 0)),
            # grid-invariant (resident) weights
            pl.BlockSpec((e_pad, f_pad), lambda i: (0, 0)),
            pl.BlockSpec((c_pad, e_pad), lambda i: (0, 0)),
        ],
        out_specs=(
            pl.BlockSpec((c_pad, tn), lambda i: (0, i)),
            pl.BlockSpec((e_pad, tn), lambda i: (0, i)),
        ),
        out_shape=(
            jax.ShapeDtypeStruct((c_pad, n_pad), scores_dtype),
            jax.ShapeDtypeStruct((e_pad, n_pad), embeds_dtype),
        ),
        compiler_params=pltpu.CompilerParams(
            dimension_semantics=("parallel",),
            vmem_limit_bytes=32 * 1024 * 1024,
        ),
        cost_estimate=cost,
    )(x_in, w_enc_p, w_cls_p)

    embeds = embeds_full[:embed_dim, :num_nodes]
    scores_t = scores_cn[:num_classes, :num_nodes].T
    return scores_t, embeds


def xavier_uniform(key, shape):
    # torch.nn.init.xavier_uniform_ on a (fan_out, fan_in) matrix
    fan_out, fan_in = shape
    bound = math.sqrt(6.0 / (fan_in + fan_out))
    return jax.random.uniform(key, shape, jnp.float32, -bound, bound)


def _reference(x, w_enc, w_cls):
    # Plain-JAX reference replicating the kernel's bf16-input / f32-accum
    # numerics (HIGHEST precision so accumulation order is the only delta).
    f32 = jnp.float32
    hp = jax.lax.Precision.HIGHEST
    xb = x.astype(jnp.bfloat16).astype(f32)
    web = w_enc.astype(jnp.bfloat16).astype(f32)
    wcb = w_cls.astype(jnp.bfloat16).astype(f32)
    emb = jnp.maximum(jnp.dot(web, xb.T, precision=hp), 0.0)
    scr = jnp.dot(wcb, emb.astype(jnp.bfloat16).astype(f32), precision=hp).T
    return scr, emb


def _check_case(key, num_nodes, feat_dim, embed_dim, num_classes):
    k_x, k_enc, k_cls = jax.random.split(key, 3)
    x = jax.random.normal(k_x, (num_nodes, feat_dim), jnp.float32)
    w_enc = xavier_uniform(k_enc, (embed_dim, feat_dim))      # encoder weight
    w_cls = xavier_uniform(k_cls, (num_classes, embed_dim))   # self.weight

    scores_t, embeds = supervised_graphsage_forward(x, w_enc, w_cls)
    jax.block_until_ready((scores_t, embeds))

    scr_ref, emb_ref = _reference(x, w_enc, w_cls)

    assert scores_t.shape == (num_nodes, num_classes)
    assert embeds.shape == (embed_dim, num_nodes)
    assert jnp.allclose(embeds.astype(jnp.float32), emb_ref, atol=1e-2, rtol=1e-2)
    assert jnp.allclose(scores_t.astype(jnp.float32), scr_ref, atol=1e-2, rtol=1e-2)


if __name__ == "__main__":
    key = jax.random.PRNGKey(0)
    k1, k2 = jax.random.split(key)

    # Small shapes consistent with the module (pad path, single grid step).
    _check_case(k1, num_nodes=8, feat_dim=32, embed_dim=32, num_classes=7)
    # Aligned shapes (no wrapper pad/cast of x, multi-step grid).
    _check_case(k2, num_nodes=256, feat_dim=128, embed_dim=64, num_classes=7)

    # TODO(synk): the graph-neighbor sampling/aggregation inside `enc` and the
    # CrossEntropyLoss in .loss() are outside this forward-pass kernel.
    print("KERNEL_OK")
</pallas_src>

<mosaic_0001>
module attributes {stable_mosaic.version = 11 : i64} {
  func.func @_graphsage_kernel(%arg0: i32, %arg1: memref<128x128xbf16, #tpu.memory_space<vmem>>, %arg2: memref<32x128xbf16, #tpu.memory_space<vmem>>, %arg3: memref<8x32xbf16, #tpu.memory_space<vmem>>, %arg4: memref<8x128xf32, #tpu.memory_space<vmem>>, %arg5: memref<32x128xbf16, #tpu.memory_space<vmem>>) attributes {dimension_semantics = [#tpu.dimension_semantics<parallel>], iteration_bounds = array<i64: 1>, scalar_prefetch = 0 : i64, scratch_operands = 0 : i64, tpu.core_type = #tpu.core_type<tc>, window_params = [{transform_indices = @transform_0, window_bounds = array<i64: 128, 128>}, {pipeline_mode = #tpu.pipeline_mode<synchronous>, transform_indices = @transform_1, window_bounds = array<i64: 32, 128>}, {pipeline_mode = #tpu.pipeline_mode<synchronous>, transform_indices = @transform_2, window_bounds = array<i64: 8, 32>}, {transform_indices = @transform_3, window_bounds = array<i64: 8, 128>}, {transform_indices = @transform_4, window_bounds = array<i64: 32, 128>}]} {
    %c0 = arith.constant 0 : index
    %c0_0 = arith.constant 0 : index
    %0 = vector.load %arg2[%c0, %c0_0] : memref<32x128xbf16, #tpu.memory_space<vmem>>, vector<32x128xbf16>
    %c0_1 = arith.constant 0 : index
    %c0_2 = arith.constant 0 : index
    %1 = vector.load %arg3[%c0_1, %c0_2] : memref<8x32xbf16, #tpu.memory_space<vmem>>, vector<8x32xbf16>
    %c0_3 = arith.constant 0 : index
    %c0_4 = arith.constant 0 : index
    %2 = vector.load %arg1[%c0_3, %c0_4] : memref<128x128xbf16, #tpu.memory_space<vmem>>, vector<128x128xbf16>
    %cst = arith.constant dense<0.000000e+00> : vector<32x128xf32>
    %3 = tpu.matmul %0, %2, %cst {dimension_numbers = #tpu.dot_dimension_numbers<[1], [1], [0], [0], [0, 0, 1, 0], [], []>} : vector<32x128xbf16>, vector<128x128xbf16>, vector<32x128xf32> -> vector<32x128xf32>
    %cst_5 = arith.constant 0.000000e+00 : f32
    %4 = vector.broadcast %cst_5 : f32 to vector<32x128xf32>
    %5 = arith.maximumf %3, %4 : vector<32x128xf32>
    %6 = arith.truncf %5 : vector<32x128xf32> to vector<32x128xbf16>
    %c0_6 = arith.constant 0 : index
    %c0_7 = arith.constant 0 : index
    %7 = vector.load %arg5[%c0_6, %c0_7] : memref<32x128xbf16, #tpu.memory_space<vmem>>, vector<32x128xbf16>
    tpu.vector_store %arg5[%c0_6, %c0_7], %6 {strides = array<i32>} : memref<32x128xbf16, #tpu.memory_space<vmem>>, vector<32x128xbf16>,
    %8 = arith.truncf %5 : vector<32x128xf32> to vector<32x128xbf16>
    %cst_8 = arith.constant dense<0.000000e+00> : vector<8x128xf32>
    %9 = tpu.matmul %1, %8, %cst_8 {dimension_numbers = #tpu.dot_dimension_numbers<[1], [0], [0], [1], [0, 0, 1, 1], [], []>} : vector<8x32xbf16>, vector<32x128xbf16>, vector<8x128xf32> -> vector<8x128xf32>
    %c0_9 = arith.constant 0 : index
    %c0_10 = arith.constant 0 : index
    %10 = vector.load %arg4[%c0_9, %c0_10] : memref<8x128xf32, #tpu.memory_space<vmem>>, vector<8x128xf32>
    tpu.vector_store %arg4[%c0_9, %c0_10], %9 {strides = array<i32>} : memref<8x128xf32, #tpu.memory_space<vmem>>, vector<8x128xf32>,
    return
  }
  func.func @transform_0(%arg0: i32) -> (i32, i32) {
    %c0_i32 = arith.constant 0 : i32
    %c0_i32_0 = arith.constant 0 : i32
    return %arg0, %c0_i32 : i32, i32
  }
  func.func @transform_1(%arg0: i32) -> (i32, i32) {
    %c0_i32 = arith.constant 0 : i32
    %c0_i32_0 = arith.constant 0 : i32
    %c0_i32_1 = arith.constant 0 : i32
    return %c0_i32, %c0_i32_0 : i32, i32
  }
  func.func @transform_2(%arg0: i32) -> (i32, i32) {
    %c0_i32 = arith.constant 0 : i32
    %c0_i32_0 = arith.constant 0 : i32
    %c0_i32_1 = arith.constant 0 : i32
    return %c0_i32, %c0_i32_0 : i32, i32
  }
  func.func @transform_3(%arg0: i32) -> (i32, i32) {
    %c0_i32 = arith.constant 0 : i32
    %c0_i32_0 = arith.constant 0 : i32
    return %c0_i32, %arg0 : i32, i32
  }
  func.func @transform_4(%arg0: i32) -> (i32, i32) {
    %c0_i32 = arith.constant 0 : i32
    %c0_i32_0 = arith.constant 0 : i32
    return %c0_i32, %arg0 : i32, i32
  }
}

</mosaic_0001>

<bundles_post_ra>
// kernel: tpu_custom_call.1
= control target key start
LH: loop header
LB: loop body
LE: loop exit
PB: predicated region body
PF: predicated region fallthrough
CT: control target
= control target key end

     0   :  { %10 = vsyncpa [#allocation3], 0  ;;  %s503_s0 = inlined_call_operand.hbm [shape: bf16[128,128], index: 0, kind: input, shape index: {}]   ;;  %s504_s1 = inlined_call_operand.hbm [shape: bf16[32,128], index: 1, kind: input, shape index: {}]   ;;  %s505_s2 = inlined_call_operand.hbm [shape: bf16[8,32], index: 2, kind: input, shape index: {}]   ;;  %s506_s3 = inlined_call_operand.hbm [shape: f32[8,128], index: 3, kind: output, shape index: {0}]   ;;  %s507_s4 = inlined_call_operand.hbm [shape: bf16[32,128], index: 4, kind: output, shape index: {1}]  }
   0x1   :  { %11 = vsyncpa [#allocation6], 0 }
   0x2   :  { %12 = vsyncpa [#allocation4], 0 }
   0x3   :  { %13 = vsyncpa [#allocation10], 0  ;;  %s31_s17 = sshll.u32 %s504_s1, 4  ;;  %s447_s18 = smov [#allocation5]   ;;  %s32_s17 = int_to_ptr.hbm [resolvable:$true] %s31_s17 }
   0x4   :  { %s33_s19 = sshll.u32 %s447_s18, 4  ;;  %s18_s22 = sshll.u32 %s503_s0, 4  ;;  %s34_s19 = int_to_ptr.vmem [resolvable:$true] %s33_s19  ;;  %s19_s22 = int_to_ptr.hbm [resolvable:$true] %s18_s22 }
   0x5   :  { %s448_s23 = smov 64   ;;  %s449_s24 = smov 4  }
   0x6   :  { %39 = dma.hbm_to_vmem [thread:$0]  %s32_s17, 256, %s34_s19, [#allocation6], %s448_s23, %s448_s23, %s449_s24  }
   0x7   :  { %s450_s25 = smov [#allocation2]   ;;  %s45_s1 = sshll.u32 %s505_s2, 4  ;;  %s46_s1 = int_to_ptr.hbm [resolvable:$true] %s45_s1 }
   0x8   :  { %s20_s26 = sshll.u32 %s450_s25, 4  ;;  %s451_s0 = smov [#allocation7]   ;;  %s21_s26 = int_to_ptr.vmem [resolvable:$true] %s20_s26 }
   0x9   :  { %26 = dma.hbm_to_vmem [thread:$0]  %s19_s22, 1024, %s21_s26, [#allocation3], %s448_s23, %s448_s23, %s449_s24  }
   0xa   :  { %s47_s29 = sshll.u32 %s451_s0, 4  ;;  %s48_s29 = int_to_ptr.vmem [resolvable:$true] %s47_s29 }
   0xb   :  { %50 = dma.hbm_to_vmem [thread:$0]  %s46_s1, 64, %s48_s29, [#allocation6]  }
   0xc   :  { %439 = dma.done.wait [#allocation3], 1024  }
   0xd   :  { %440 = vsyncadd [#allocation3], 4294966272 }
   0xe   :  { %441 = dma.done.wait [#allocation6], 320  }
   0xf   :  { %442 = vsyncadd [#allocation6], 4294966976  ;;  %v292_v0 = vld [vmem:[#allocation2 + $0x38] sm:$0xff]  ;;  %v291_v1 = vld [vmem:[#allocation2 + $0x30] sm:$0xff]  ;;  %vm188_vm0 = vcmask 261120   ;;  %s452_s2 = smov [#allocation9]  }
  0x10   :  { %304 = vmatpush.bf16.xpose.msra.mxu2 %v292_v0  ;;  %145 = vmatpush.bf16.xpose.msra.mxu0 %v292_v0  ;;  %v290_v2 = vld [vmem:[#allocation2 + $0x28] sm:$0xff]  ;;  %v289_v3 = vld [vmem:[#allocation2 + $0x20] sm:$0xff]  ;;  %v288_v4 = vld [vmem:[#allocation2 + $0x18] sm:$0xff]  ;;  %s221_s30 = sshll.u32 %s452_s2, 4  ;;  %s223_s7 = sshll.u32 %s507_s4, 4  ;;  %s222_s30 = int_to_ptr.vmem [resolvable:$true] %s221_s30  ;;  %s224_s7 = int_to_ptr.hbm [resolvable:$true] %s223_s7 }
  0x11   :  { %v287_v5 = vld [vmem:[#allocation2 + $0x10] sm:$0xff]  ;;  %v286_v6 = vld [vmem:[#allocation2 + $0x8] sm:$0xff]  ;;  %v285_v7 = vld [vmem:[#allocation2] sm:$0xff]  ;;  %s453_s8 = smov [#allocation8]   ;;  %s213_s12 = sshll.u32 %s506_s3, 4  ;;  %s214_s12 = int_to_ptr.hbm [resolvable:$true] %s213_s12 }
  0x12   :  { %v284_v8 = vld [vmem:[#allocation5 + $0x8] sm:$0xff]  ;;  %v283_v9 = vld [vmem:[#allocation5] sm:$0xff]  ;;  %v68_v30 = vld [vmem:[#allocation7] sm:$0xf]  ;;  %s211_s9 = sshll.u32 %s453_s8, 4  ;;  %s212_s9 = int_to_ptr.vmem [resolvable:$true] %s211_s9 }
  0x18   :  { %305 = vmatpush.bf16.xpose.msra.mxu2 %v291_v1  ;;  %146 = vmatpush.bf16.xpose.msra.mxu0 %v291_v1 }
  0x20   :  { %306 = vmatpush.bf16.xpose.msra.mxu2 %v290_v2  ;;  %147 = vmatpush.bf16.xpose.msra.mxu0 %v290_v2 }
  0x28   :  { %307 = vmatpush.bf16.xpose.msra.mxu2 %v289_v3  ;;  %148 = vmatpush.bf16.xpose.msra.mxu0 %v289_v3 }
  0x30   :  { %308 = vmatpush.bf16.xpose.msra.mxu2 %v288_v4  ;;  %149 = vmatpush.bf16.xpose.msra.mxu0 %v288_v4 }
  0x38   :  { %309 = vmatpush.bf16.xpose.msra.mxu2 %v287_v5  ;;  %150 = vmatpush.bf16.xpose.msra.mxu0 %v287_v5 }
  0x40   :  { %310 = vmatpush.bf16.xpose.msra.mxu2 %v286_v6  ;;  %151 = vmatpush.bf16.xpose.msra.mxu0 %v286_v6 }
  0x48   :  { %311 = vmatpush.bf16.xpose.msra.mxu2 %v285_v7  ;;  %152 = vmatpush.bf16.xpose.msra.mxu0 %v285_v7 }
  0x4f   :  { %158 = vmatmul.bf16.vlgmr.msra.gmra.mxu2 %v284_v8  ;;  %153 = vmatmul.bf16.vlgmr.msra.gmra.mxu0 %v283_v9 }
  0xcc   :  { %v154_v10 = vpop.f32.mrf.mxu0 }
  0xcd   :  { %v164_v12 = vmax.f32 %v154_v10, 0.0 }
  0xcf   :  { %v168_v20 = vpack.c.bf16 %v164_v12, %v164_v12 }
  0xd1   :  { %v180_v26 = vunpack.c.l.b16 %v168_v20 }
  0xd2   :  { %v159_v11 = vpop.f32.mrf.mxu2 }
  0xd3   :  { %v166_v15 = vmax.f32 %v159_v11, 0.0 }
  0xd4   :  { %v156_v13 = vpop.f32.mrf.mxu0 }
  0xd5   :  { %v165_v14 = vmax.f32 %v156_v13, 0.0  ;;  %v170_v19 = vpack.c.bf16 %v166_v15, %v166_v15 }
  0xd7   :  { %v296_v16 = vpack.c.bf16 %v165_v14, %v164_v12  ;;  %v169_v21 = vpack.c.bf16 %v165_v14, %v165_v14  ;;  %v182_v24 = vunpack.c.l.b16 %v170_v19 }
  0xd9   :  { %297 = vst [vmem:[#allocation9] sm:$0xff] %v296_v16   ;;  %v181_v27 = vunpack.c.l.b16 %v169_v21 }
  0xda   :  { %v161_v17 = vpop.f32.mrf.mxu2 }
  0xdb   :  { %v167_v18 = vmax.f32 %v161_v17, 0.0  ;;  %v184_v29 = vpack.c.b16 %v181_v27, %v180_v26 }
  0xdd   :  { %v171_v22 = vpack.c.bf16 %v167_v18, %v167_v18  ;;  %v301_v23 = vpack.c.bf16 %v167_v18, %v166_v15 }
  0xdf   :  { %303 = vst [vmem:[#allocation9 + $0x8] sm:$0xff] %v301_v23   ;;  %v183_v25 = vunpack.c.l.b16 %v171_v22 }
  0xe0   :  { %229 = dma.vmem_to_hbm [thread:$0]  %s222_s30, 256, %s224_s7, [#allocation10], %s448_s23, %s448_s23, %s449_s24  }
  0xe1   :  { %v185_v28 = vpack.c.b16 %v183_v25, %v182_v24 }
  0xe3   :  { %198 = vmatpush.bf16.msra.mxu1 %v185_v28 }
  0xe7   :  { %199 = vmatpush.bf16.msra.mxu1 %v184_v29 }
  0xea   :  { %282 = vmatmul.msk.bf16.vlgmr.msra.gmra.mxu1 %vm188_vm0, %v68_v30 }
 0x167   :  { %v201_v31 = vpop.f32.mrf.mxu1 }
 0x168   :  { %205 = vst [vmem:[#allocation8] sm:$0xff] %v201_v31 }
 0x169   :  { %216 = dma.vmem_to_hbm [thread:$0]  %s212_s9, 128, %s214_s12, [#allocation4]  }
 0x16f   :  { %v203_v32 = vpop.f32.mrf.mxu1 }
 0x170   :  { %443 = dma.done.wait [#allocation4], 128  }
 0x171   :  { %444 = vsyncadd [#allocation4], 4294967168 }
 0x172   :  { %445 = dma.done.wait [#allocation10], 256  }
 0x173   :  { %446 = vsyncadd [#allocation10], 4294967040 }
 0x174   :  { %238 = vsyncpa [#allocation3], 1 }
 0x175   :  { %239 = vsyncpa [#allocation6], 1 }
 0x176   :  { %240 = vsyncpa [#allocation4], 1 }
 0x177   :  { %241 = vsyncpa [#allocation10], 1 }

</bundles_post_ra>
